<compile_context>
chip_gen: v7x
topology: tpu7x:2x2x1
jax: 0.10.0
libtpu: 0.0.40
codegen_flags: <defaults>
</compile_context>

<pallas_src>
import functools

import jax
import jax.numpy as jnp
from jax import lax
from jax.experimental import pallas as pl
from jax.experimental.pallas import tpu as pltpu

LANE = 128  # TPU vreg lane width


def _mlp_kernel(x_ref,
                w1_ref, b1_ref,
                w2_ref, b2_ref,
                w3_ref, b3_ref,
                w4_ref, b4_ref,
                w5_ref, b5_ref,
                o_ref, *, compute_dtype):
    # x_ref: (tm, in_feats) batch-major block (no wrapper transpose needed).
    # Layer 1 contracts x's last dim -> (64, tm): batch moves to the lane axis.
    x = x_ref[...]
    h = lax.dot_general(
        w1_ref[...], x,
        dimension_numbers=(((1,), (1,)), ((), ())),   # contract both last dims
        preferred_element_type=jnp.float32)           # (64, tm), f32 acc
    h = jnp.maximum(h + b1_ref[...], 0.0)

    # Hidden layers 2..4: W @ h + b, ReLU; matmul inputs in compute_dtype,
    # accumulation + bias + ReLU in f32. (Python loop unrolls at trace time.)
    for w_ref, b_ref in ((w2_ref, b2_ref), (w3_ref, b3_ref), (w4_ref, b4_ref)):
        h = jnp.maximum(
            jnp.dot(w_ref[...], h.astype(compute_dtype),
                    preferred_element_type=jnp.float32) + b_ref[...],
            0.0)

    # Output layer (no activation).
    y = jnp.dot(w5_ref[...], h.astype(compute_dtype),
                preferred_element_type=jnp.float32) + b5_ref[...]
    o_ref[...] = y.astype(o_ref.dtype)                # (1, tm) lane-dense store


def nn_model_forward(x, params, *, tm=8192, use_bf16=True):
    """x: (B, in_feats) f32. params: PyTorch-layout weights (out,in), biases (out,).

    Returns (B, 1) f32, same semantics as the PyTorch module.
    `use_bf16=True` runs the matmuls with bf16 inputs / f32 accumulation
    (fast path, ~1e-2 relative error); `use_bf16=False` keeps full f32.
    """
    B, in_feats = x.shape
    compute_dtype = jnp.bfloat16 if use_bf16 else jnp.float32

    # ---- batch-tile selection (tile sits on the lane axis in-kernel) ----
    b_lane_pad = pl.cdiv(B, LANE) * LANE
    tm = max(LANE, min(int(tm), b_lane_pad))
    tm = (tm // LANE) * LANE
    # v7x megacore: keep >=2 grid tiles whenever the padded batch allows so the
    # "parallel" grid axis can shard across both TensorCores.
    if b_lane_pad >= 2 * LANE and pl.cdiv(B, tm) < 2:
        tm = max(LANE, (b_lane_pad // 2 // LANE) * LANE)
    n_tiles = pl.cdiv(B, tm)
    b_pad = n_tiles * tm

    # Input stays batch-major; only pad the batch tail (fusible, no transpose).
    x_p = x.astype(compute_dtype)
    if b_pad != B:
        x_p = jnp.pad(x_p, ((0, b_pad - B), (0, 0)))

    ws = [params[f"w{i}"].astype(compute_dtype) for i in range(1, 6)]        # (out, in)
    bs = [params[f"b{i}"].astype(jnp.float32).reshape(-1, 1) for i in range(1, 6)]  # (out, 1)

    def full_spec(arr):
        # Tiny weights/biases: full-array resident block (constant index map).
        return pl.BlockSpec(arr.shape, lambda i: (0, 0))

    in_specs = [pl.BlockSpec((tm, in_feats), lambda i: (i, 0))]
    for w, b in zip(ws, bs):
        in_specs.append(full_spec(w))
        in_specs.append(full_spec(b))

    kernel = functools.partial(_mlp_kernel, compute_dtype=compute_dtype)

    out_t = pl.pallas_call(
        kernel,
        out_shape=jax.ShapeDtypeStruct((1, b_pad), jnp.float32),
        grid_spec=pltpu.PrefetchScalarGridSpec(
            num_scalar_prefetch=0,
            grid=(n_tiles,),
            in_specs=in_specs,
            out_specs=pl.BlockSpec((1, tm), lambda i: (0, i)),
        ),
        compiler_params=pltpu.CompilerParams(
            dimension_semantics=("parallel",),        # shard batch tiles across TCs
            vmem_limit_bytes=32 * 1024 * 1024,
        ),
    )(x_p, *[a for pair in zip(ws, bs) for a in pair])

    return out_t[:, :B].T  # (B, 1); padded columns (bias/ReLU junk) sliced off


def init_params(key, in_feats=8):
    """PyTorch nn.Linear default init (uniform +-1/sqrt(fan_in)), native layout:
    weight (out, in), bias (out,)."""
    dims = [(in_feats, 64), (64, 32), (32, 16), (16, 8), (8, 1)]
    params = {}
    for idx, (fan_in, fan_out) in enumerate(dims, start=1):
        key, kw, kb = jax.random.split(key, 3)
        bound = 1.0 / jnp.sqrt(jnp.float32(fan_in))
        params[f"w{idx}"] = jax.random.uniform(
            kw, (fan_out, fan_in), jnp.float32, -bound, bound)
        params[f"b{idx}"] = jax.random.uniform(
            kb, (fan_out,), jnp.float32, -bound, bound)
    return params


def reference_forward(x, params):
    h = x
    for idx in range(1, 5):
        h = jnp.maximum(h @ params[f"w{idx}"].T + params[f"b{idx}"], 0.0)
    return h @ params["w5"].T + params["b5"]


if __name__ == "__main__":
    key = jax.random.PRNGKey(0)
    k_x, k_p = jax.random.split(key)

    B, in_feats = 16, 8
    x = jax.random.normal(k_x, (B, in_feats), jnp.float32)
    params = init_params(k_p, in_feats)
    ref = reference_forward(x, params)

    # f32 path: bit-for-bit-ish parity with the PyTorch/JAX reference.
    out_f32 = jax.block_until_ready(nn_model_forward(x, params, use_bf16=False))
    assert out_f32.shape == (B, 1)
    assert jnp.allclose(out_f32, ref, atol=2e-5, rtol=2e-5), "f32 path mismatch"

    # bf16 fast path: bf16 matmul inputs, f32 accumulation (looser tolerance).
    out_bf16 = jax.block_until_ready(nn_model_forward(x, params, use_bf16=True))
    assert out_bf16.shape == (B, 1)
    assert jnp.allclose(out_bf16, ref, atol=5e-2, rtol=5e-2), "bf16 path mismatch"

    print("KERNEL_OK")
</pallas_src>

<mosaic_0001>
module attributes {stable_mosaic.version = 11 : i64} {
  func.func @_mlp_kernel(%arg0: i32, %arg1: memref<128x8xf32, #tpu.memory_space<vmem>>, %arg2: memref<64x8xf32, #tpu.memory_space<vmem>>, %arg3: memref<64x1xf32, #tpu.memory_space<vmem>>, %arg4: memref<32x64xf32, #tpu.memory_space<vmem>>, %arg5: memref<32x1xf32, #tpu.memory_space<vmem>>, %arg6: memref<16x32xf32, #tpu.memory_space<vmem>>, %arg7: memref<16x1xf32, #tpu.memory_space<vmem>>, %arg8: memref<8x16xf32, #tpu.memory_space<vmem>>, %arg9: memref<8x1xf32, #tpu.memory_space<vmem>>, %arg10: memref<1x8xf32, #tpu.memory_space<vmem>>, %arg11: memref<1x1xf32, #tpu.memory_space<vmem>>, %arg12: memref<1x128xf32, #tpu.memory_space<vmem>>) attributes {dimension_semantics = [#tpu.dimension_semantics<parallel>], iteration_bounds = array<i64: 1>, scalar_prefetch = 0 : i64, scratch_operands = 0 : i64, tpu.core_type = #tpu.core_type<tc>, window_params = [{transform_indices = @transform_0, window_bounds = array<i64: 128, 8>}, {pipeline_mode = #tpu.pipeline_mode<synchronous>, transform_indices = @transform_1, window_bounds = array<i64: 64, 8>}, {pipeline_mode = #tpu.pipeline_mode<synchronous>, transform_indices = @transform_2, window_bounds = array<i64: 64, 1>}, {pipeline_mode = #tpu.pipeline_mode<synchronous>, transform_indices = @transform_3, window_bounds = array<i64: 32, 64>}, {pipeline_mode = #tpu.pipeline_mode<synchronous>, transform_indices = @transform_4, window_bounds = array<i64: 32, 1>}, {pipeline_mode = #tpu.pipeline_mode<synchronous>, transform_indices = @transform_5, window_bounds = array<i64: 16, 32>}, {pipeline_mode = #tpu.pipeline_mode<synchronous>, transform_indices = @transform_6, window_bounds = array<i64: 16, 1>}, {pipeline_mode = #tpu.pipeline_mode<synchronous>, transform_indices = @transform_7, window_bounds = array<i64: 8, 16>}, {pipeline_mode = #tpu.pipeline_mode<synchronous>, transform_indices = @transform_8, window_bounds = array<i64: 8, 1>}, {pipeline_mode = #tpu.pipeline_mode<synchronous>, transform_indices = @transform_9, window_bounds = array<i64: 1, 8>}, {pipeline_mode = #tpu.pipeline_mode<synchronous>, transform_indices = @transform_10, window_bounds = array<i64: 1, 1>}, {transform_indices = @transform_11, window_bounds = array<i64: 1, 128>}]} {
    %c0 = arith.constant 0 : index
    %c0_0 = arith.constant 0 : index
    %0 = vector.load %arg1[%c0, %c0_0] : memref<128x8xf32, #tpu.memory_space<vmem>>, vector<128x8xf32>
    %c0_1 = arith.constant 0 : index
    %c0_2 = arith.constant 0 : index
    %1 = vector.load %arg2[%c0_1, %c0_2] : memref<64x8xf32, #tpu.memory_space<vmem>>, vector<64x8xf32>
    %cst = arith.constant dense<0.000000e+00> : vector<64x128xf32>
    %2 = tpu.matmul %1, %0, %cst {dimension_numbers = #tpu.dot_dimension_numbers<[1], [1], [0], [0], [0, 0, 1, 0], [], []>} : vector<64x8xf32>, vector<128x8xf32>, vector<64x128xf32> -> vector<64x128xf32>
    %c0_3 = arith.constant 0 : index
    %c0_4 = arith.constant 0 : index
    %3 = vector.load %arg3[%c0_3, %c0_4] : memref<64x1xf32, #tpu.memory_space<vmem>>, vector<64x1xf32>
    %4 = vector.broadcast %3 : vector<64x1xf32> to vector<64x128xf32>
    %5 = arith.addf %2, %4 : vector<64x128xf32>
    %cst_5 = arith.constant 0.000000e+00 : f32
    %6 = vector.broadcast %cst_5 : f32 to vector<64x128xf32>
    %7 = arith.maximumf %5, %6 : vector<64x128xf32>
    %c0_6 = arith.constant 0 : index
    %c0_7 = arith.constant 0 : index
    %8 = vector.load %arg4[%c0_6, %c0_7] : memref<32x64xf32, #tpu.memory_space<vmem>>, vector<32x64xf32>
    %cst_8 = arith.constant dense<0.000000e+00> : vector<32x128xf32>
    %9 = tpu.matmul %8, %7, %cst_8 {dimension_numbers = #tpu.dot_dimension_numbers<[1], [0], [0], [1], [0, 0, 1, 1], [], []>} : vector<32x64xf32>, vector<64x128xf32>, vector<32x128xf32> -> vector<32x128xf32>
    %c0_9 = arith.constant 0 : index
    %c0_10 = arith.constant 0 : index
    %10 = vector.load %arg5[%c0_9, %c0_10] : memref<32x1xf32, #tpu.memory_space<vmem>>, vector<32x1xf32>
    %11 = vector.broadcast %10 : vector<32x1xf32> to vector<32x128xf32>
    %12 = arith.addf %9, %11 : vector<32x128xf32>
    %cst_11 = arith.constant 0.000000e+00 : f32
    %13 = vector.broadcast %cst_11 : f32 to vector<32x128xf32>
    %14 = arith.maximumf %12, %13 : vector<32x128xf32>
    %c0_12 = arith.constant 0 : index
    %c0_13 = arith.constant 0 : index
    %15 = vector.load %arg6[%c0_12, %c0_13] : memref<16x32xf32, #tpu.memory_space<vmem>>, vector<16x32xf32>
    %cst_14 = arith.constant dense<0.000000e+00> : vector<16x128xf32>
    %16 = tpu.matmul %15, %14, %cst_14 {dimension_numbers = #tpu.dot_dimension_numbers<[1], [0], [0], [1], [0, 0, 1, 1], [], []>} : vector<16x32xf32>, vector<32x128xf32>, vector<16x128xf32> -> vector<16x128xf32>
    %c0_15 = arith.constant 0 : index
    %c0_16 = arith.constant 0 : index
    %17 = vector.load %arg7[%c0_15, %c0_16] : memref<16x1xf32, #tpu.memory_space<vmem>>, vector<16x1xf32>
    %18 = vector.broadcast %17 : vector<16x1xf32> to vector<16x128xf32>
    %19 = arith.addf %16, %18 : vector<16x128xf32>
    %cst_17 = arith.constant 0.000000e+00 : f32
    %20 = vector.broadcast %cst_17 : f32 to vector<16x128xf32>
    %21 = arith.maximumf %19, %20 : vector<16x128xf32>
    %c0_18 = arith.constant 0 : index
    %c0_19 = arith.constant 0 : index
    %22 = vector.load %arg8[%c0_18, %c0_19] : memref<8x16xf32, #tpu.memory_space<vmem>>, vector<8x16xf32>
    %cst_20 = arith.constant dense<0.000000e+00> : vector<8x128xf32>
    %23 = tpu.matmul %22, %21, %cst_20 {dimension_numbers = #tpu.dot_dimension_numbers<[1], [0], [0], [1], [0, 0, 1, 1], [], []>} : vector<8x16xf32>, vector<16x128xf32>, vector<8x128xf32> -> vector<8x128xf32>
    %c0_21 = arith.constant 0 : index
    %c0_22 = arith.constant 0 : index
    %24 = vector.load %arg9[%c0_21, %c0_22] : memref<8x1xf32, #tpu.memory_space<vmem>>, vector<8x1xf32>
    %25 = vector.broadcast %24 : vector<8x1xf32> to vector<8x128xf32>
    %26 = arith.addf %23, %25 : vector<8x128xf32>
    %cst_23 = arith.constant 0.000000e+00 : f32
    %27 = vector.broadcast %cst_23 : f32 to vector<8x128xf32>
    %28 = arith.maximumf %26, %27 : vector<8x128xf32>
    %c0_24 = arith.constant 0 : index
    %c0_25 = arith.constant 0 : index
    %29 = vector.load %arg10[%c0_24, %c0_25] : memref<1x8xf32, #tpu.memory_space<vmem>>, vector<1x8xf32>
    %cst_26 = arith.constant dense<0.000000e+00> : vector<1x128xf32>
    %30 = tpu.matmul %29, %28, %cst_26 {dimension_numbers = #tpu.dot_dimension_numbers<[1], [0], [0], [1], [0, 0, 1, 1], [], []>} : vector<1x8xf32>, vector<8x128xf32>, vector<1x128xf32> -> vector<1x128xf32>
    %c0_27 = arith.constant 0 : index
    %c0_28 = arith.constant 0 : index
    %31 = vector.load %arg11[%c0_27, %c0_28] : memref<1x1xf32, #tpu.memory_space<vmem>>, vector<1x1xf32>
    %32 = vector.broadcast %31 : vector<1x1xf32> to vector<1x128xf32>
    %33 = arith.addf %30, %32 : vector<1x128xf32>
    %c0_29 = arith.constant 0 : index
    %c0_30 = arith.constant 0 : index
    %34 = vector.load %arg12[%c0_29, %c0_30] : memref<1x128xf32, #tpu.memory_space<vmem>>, vector<1x128xf32>
    tpu.vector_store %arg12[%c0_29, %c0_30], %33 {strides = array<i32>} : memref<1x128xf32, #tpu.memory_space<vmem>>, vector<1x128xf32>,
    return
  }
  func.func @transform_0(%arg0: i32) -> (i32, i32) {
    %c0_i32 = arith.constant 0 : i32
    %c0_i32_0 = arith.constant 0 : i32
    return %arg0, %c0_i32 : i32, i32
  }
  func.func @transform_1(%arg0: i32) -> (i32, i32) {
    %c0_i32 = arith.constant 0 : i32
    %c0_i32_0 = arith.constant 0 : i32
    %c0_i32_1 = arith.constant 0 : i32
    return %c0_i32, %c0_i32_0 : i32, i32
  }
  func.func @transform_2(%arg0: i32) -> (i32, i32) {
    %c0_i32 = arith.constant 0 : i32
    %c0_i32_0 = arith.constant 0 : i32
    %c0_i32_1 = arith.constant 0 : i32
    return %c0_i32, %c0_i32_0 : i32, i32
  }
  func.func @transform_3(%arg0: i32) -> (i32, i32) {
    %c0_i32 = arith.constant 0 : i32
    %c0_i32_0 = arith.constant 0 : i32
    %c0_i32_1 = arith.constant 0 : i32
    return %c0_i32, %c0_i32_0 : i32, i32
  }
  func.func @transform_4(%arg0: i32) -> (i32, i32) {
    %c0_i32 = arith.constant 0 : i32
    %c0_i32_0 = arith.constant 0 : i32
    %c0_i32_1 = arith.constant 0 : i32
    return %c0_i32, %c0_i32_0 : i32, i32
  }
  func.func @transform_5(%arg0: i32) -> (i32, i32) {
    %c0_i32 = arith.constant 0 : i32
    %c0_i32_0 = arith.constant 0 : i32
    %c0_i32_1 = arith.constant 0 : i32
    return %c0_i32, %c0_i32_0 : i32, i32
  }
  func.func @transform_6(%arg0: i32) -> (i32, i32) {
    %c0_i32 = arith.constant 0 : i32
    %c0_i32_0 = arith.constant 0 : i32
    %c0_i32_1 = arith.constant 0 : i32
    return %c0_i32, %c0_i32_0 : i32, i32
  }
  func.func @transform_7(%arg0: i32) -> (i32, i32) {
    %c0_i32 = arith.constant 0 : i32
    %c0_i32_0 = arith.constant 0 : i32
    %c0_i32_1 = arith.constant 0 : i32
    return %c0_i32, %c0_i32_0 : i32, i32
  }
  func.func @transform_8(%arg0: i32) -> (i32, i32) {
    %c0_i32 = arith.constant 0 : i32
    %c0_i32_0 = arith.constant 0 : i32
    %c0_i32_1 = arith.constant 0 : i32
    return %c0_i32, %c0_i32_0 : i32, i32
  }
  func.func @transform_9(%arg0: i32) -> (i32, i32) {
    %c0_i32 = arith.constant 0 : i32
    %c0_i32_0 = arith.constant 0 : i32
    %c0_i32_1 = arith.constant 0 : i32
    return %c0_i32, %c0_i32_0 : i32, i32
  }
  func.func @transform_10(%arg0: i32) -> (i32, i32) {
    %c0_i32 = arith.constant 0 : i32
    %c0_i32_0 = arith.constant 0 : i32
    %c0_i32_1 = arith.constant 0 : i32
    return %c0_i32, %c0_i32_0 : i32, i32
  }
  func.func @transform_11(%arg0: i32) -> (i32, i32) {
    %c0_i32 = arith.constant 0 : i32
    %c0_i32_0 = arith.constant 0 : i32
    return %c0_i32, %arg0 : i32, i32
  }
}

</mosaic_0001>

<bundles_post_ra>
// kernel: tpu_custom_call.1
= control target key start
LH: loop header
LB: loop body
LE: loop exit
PB: predicated region body
PF: predicated region fallthrough
CT: control target
= control target key end

     0   :  { %s1258_s0 = inlined_call_operand.vmem [shape: f32[128,8], index: 0, kind: input, shape index: {}]   ;;  %s1259_s1 = inlined_call_operand.vmem [shape: f32[64,8], index: 1, kind: input, shape index: {}]   ;;  %s1260_s2 = inlined_call_operand.vmem [shape: f32[64,1], index: 2, kind: input, shape index: {}]   ;;  %s1261_s3 = inlined_call_operand.vmem [shape: f32[32,64], index: 3, kind: input, shape index: {}]   ;;  %s1262_s4 = inlined_call_operand.vmem [shape: f32[32,1], index: 4, kind: input, shape index: {}]   ;;  %s1263_s5 = inlined_call_operand.vmem [shape: f32[16,32], index: 5, kind: input, shape index: {}]   ;;  %s1264_s6 = inlined_call_operand.vmem [shape: f32[16,1], index: 6, kind: input, shape index: {}]   ;;  %s1265_s7 = inlined_call_operand.vmem [shape: f32[8,16], index: 7, kind: input, shape index: {}]   ;;  %s1266_s8 = inlined_call_operand.vmem [shape: f32[8,1], index: 8, kind: input, shape index: {}]   ;;  %s1267_s9 = inlined_call_operand.vmem [shape: f32[1,8], index: 9, kind: input, shape index: {}]   ;;  %s1268_s10 = inlined_call_operand.<no memory space> [shape: f32[1,1], index: 10, kind: input, shape index: {}]   ;;  %s1269_s11 = inlined_call_operand.hbm [shape: f32[1,128], index: 11, kind: output, shape index: {}]  }
   0x1   :  { %v16_v0 = vstv %s1268_s10 }
   0x2   :  { %17 = vst [vmem:[#allocation2] sm:$0x1] %v16_v0 }
   0x3   :  { %v41_v1 = vld [vmem:[%s1258_s0] sm:$0xff]  ;;  %v42_v2 = vld [vmem:[%s1258_s0 + $0x8] sm:$0xff]  ;;  %vm113_vm0 = vcmask 64512   ;;  %v43_v3 = vld [vmem:[%s1258_s0 + $0x10] sm:$0xff]  ;;  %v982_v7 = vmov 0  }
   0x4   :  { %v876_v4 = vpack.c.bf16 %v42_v2, %v41_v1  ;;  %vm1061_vm1 = vmpackc.low %vm113_vm0, %vm113_vm0  ;;  %v44_v6 = vld [vmem:[%s1258_s0 + $0x18] sm:$0xff]  ;;  %956 = vset.pattern.permute.xlu0 %v982_v7  ;;  %957 = vset.pattern.permute.xlu1 %v982_v7  ;;  %v57_v9 = vld [vmem:[%s1259_s1] sm:$0xff] }
   0x5   :  { %v882_v8 = vpack.c.bf16 %v44_v6, %v43_v3  ;;  %v45_v10 = vld [vmem:[%s1258_s0 + $0x20] sm:$0xff]  ;;  %v46_v11 = vld [vmem:[%s1258_s0 + $0x28] sm:$0xff]  ;;  %819 = vmatprep.mubr.msk.f32.mxu0 %vm113_vm0, %v57_v9  ;;  %v67_v13 = vld [vmem:[%s1260_s2 + $0x10] sm:$0xff] }
   0x6   :  { %878 = vmatprep.subr.msk.bf16.mxu0 %vm1061_vm1, %v876_v4  ;;  %v65_v12 = vld [vmem:[%s1260_s2] sm:$0xff]  ;;  %v888_v14 = vpack.c.bf16 %v46_v11, %v45_v10  ;;  %85 = vperm.xlu1 %957, %v67_v13   ;;  %v66_v15 = vld [vmem:[%s1260_s2 + $0x8] sm:$0xff]  ;;  %v68_v16 = vld [vmem:[%s1260_s2 + $0x18] sm:$0xff] }
   0x7   :  { %881 = vmatpush3.bf16.xpose.msk.msra.mxu0 %vm1061_vm1, %v876_v4  ;;  %75 = vperm.xlu0 %956, %v65_v12  }
   0x8   :  { %884 = vmatprep.subr.msk.bf16.mxu0 %vm1061_vm1, %v882_v8 }
   0xb   :  { %80 = vperm.xlu0 %956, %v66_v15  }
   0xf   :  { %887 = vmatpush3.bf16.xpose.msk.msra.mxu0 %vm1061_vm1, %v882_v8 }
  0x10   :  { %890 = vmatprep.subr.msk.bf16.mxu0 %vm1061_vm1, %v888_v14 }
  0x11   :  { %18 = vsyncpa [#allocation4], 0  ;;  %v47_v17 = vld [vmem:[%s1258_s0 + $0x30] sm:$0xff]  ;;  %v48_v18 = vld [vmem:[%s1258_s0 + $0x38] sm:$0xff]  ;;  %90 = vperm.xlu1 %957, %v68_v16   ;;  %vm327_vm2 = vcmask 523264   ;;  %vm443_vm3 = vcmask 261120  }
  0x12   :  { %v69_v19 = vld [vmem:[%s1260_s2 + $0x20] sm:$0xff]  ;;  %v70_v20 = vld [vmem:[%s1260_s2 + $0x28] sm:$0xff]  ;;  %v894_v21 = vpack.c.bf16 %v48_v18, %v47_v17  ;;  %v71_v22 = vld [vmem:[%s1260_s2 + $0x30] sm:$0xff]  ;;  %vm984_vm4 = vmmov 0   ;;  %vm534_vm5 = vcmask 130048  }
  0x13   :  { %95 = vperm.xlu0 %956, %v69_v19   ;;  %v72_v23 = vld [vmem:[%s1260_s2 + $0x38] sm:$0xff]  ;;  %v49_v24 = vld [vmem:[%s1258_s0 + $0x40] sm:$0xff]  ;;  %v50_v25 = vld [vmem:[%s1258_s0 + $0x48] sm:$0xff] }
  0x14   :  { %v303_v26 = vld [vmem:[%s1262_s4] sm:$0xff]  ;;  %v304_v27 = vld [vmem:[%s1262_s4 + $0x8] sm:$0xff]  ;;  %v900_v28 = vpack.c.bf16 %v50_v25, %v49_v24  ;;  %v305_v29 = vld [vmem:[%s1262_s4 + $0x10] sm:$0xff] }
  0x15   :  { %100 = vperm.xlu1 %957, %v70_v20   ;;  %v306_v30 = vld [vmem:[%s1262_s4 + $0x18] sm:$0xff]  ;;  %v51_v31 = vld [vmem:[%s1258_s0 + $0x50] sm:$0xff]  ;;  %v431_v33 = vld [vmem:[%s1264_s6] sm:$0xff] }
  0x16   :  { %v52_v32 = vld [vmem:[%s1258_s0 + $0x58] sm:$0xff]  ;;  %v432_v34 = vld [vmem:[%s1264_s6 + $0x8] sm:$0xff]  ;;  %v528_v36 = vld [vmem:[%s1266_s8] sm:$0xff] }
  0x17   :  { %893 = vmatpush3.bf16.xpose.msk.msra.mxu0 %vm1061_vm1, %v888_v14  ;;  %105 = vperm.xlu0 %956, %v71_v22   ;;  %v906_v35 = vpack.c.bf16 %v52_v32, %v51_v31  ;;  %v610_v37 = vld [vmem:[#allocation2] sm:$0x1]  ;;  %v54_v39 = vld [vmem:[%s1258_s0 + $0x68] sm:$0xff]  ;;  %v55_v41 = vld [vmem:[%s1258_s0 + $0x70] sm:$0xff] }
  0x18   :  { %896 = vmatprep.subr.msk.bf16.mxu0 %vm1061_vm1, %v894_v21  ;;  %v53_v38 = vld [vmem:[%s1258_s0 + $0x60] sm:$0xff]  ;;  %v56_v42 = vld [vmem:[%s1258_s0 + $0x78] sm:$0xff]  ;;  %v58_v44 = vld [vmem:[%s1259_s1 + $0x8] sm:$0xff] }
  0x19   :  { %110 = vperm.xlu1 %957, %v72_v23   ;;  %v912_v40 = vpack.c.bf16 %v54_v39, %v53_v38  ;;  %v918_v43 = vpack.c.bf16 %v56_v42, %v55_v41  ;;  %v59_v45 = vld [vmem:[%s1259_s1 + $0x10] sm:$0xff]  ;;  %v60_v46 = vld [vmem:[%s1259_s1 + $0x18] sm:$0xff]  ;;  %v61_v47 = vld [vmem:[%s1259_s1 + $0x20] sm:$0xff] }
  0x1a   :  { %v62_v48 = vld [vmem:[%s1259_s1 + $0x28] sm:$0xff]  ;;  %v63_v49 = vld [vmem:[%s1259_s1 + $0x30] sm:$0xff]  ;;  %v64_v50 = vld [vmem:[%s1259_s1 + $0x38] sm:$0xff] }
  0x1b   :  { %309 = vperm.xlu0 %956, %v303_v26   ;;  %v299_v51 = vld [vmem:[%s1261_s3] sm:$0xff]  ;;  %v300_v24 = vld [vmem:[%s1261_s3 + $0x8] sm:$0xff]  ;;  %v301_v25 = vld [vmem:[%s1261_s3 + $0x10] sm:$0xff] }
  0x1c   :  { %847 = vmatprep.mubr.msk.f32.mxu1 %vm327_vm2, %v299_v51  ;;  %v302_v26 = vld [vmem:[%s1261_s3 + $0x18] sm:$0xff] }
  0x1d   :  { %314 = vperm.xlu1 %957, %v304_v27   ;;  %v429_v27 = vld [vmem:[%s1263_s5] sm:$0xff] }
  0x1f   :  { %899 = vmatpush3.bf16.xpose.msk.msra.mxu0 %vm1061_vm1, %v894_v21  ;;  %319 = vperm.xlu0 %956, %v305_v29  }
  0x20   :  { %902 = vmatprep.subr.msk.bf16.mxu0 %vm1061_vm1, %v900_v28 }
  0x21   :  { %324 = vperm.xlu1 %957, %v306_v30  }
  0x23   :  { %435 = vperm.xlu0 %956, %v431_v33  }
  0x25   :  { %440 = vperm.xlu1 %957, %v432_v34  }
  0x27   :  { %905 = vmatpush3.bf16.xpose.msk.msra.mxu0 %vm1061_vm1, %v900_v28  ;;  %531 = vperm.xlu0 %956, %v528_v36  }
  0x28   :  { %908 = vmatprep.subr.msk.bf16.mxu0 %vm1061_vm1, %v906_v35 }
  0x29   :  { %613 = vperm.xlu1 %957, %v610_v37  }
  0x2f   :  { %911 = vmatpush3.bf16.xpose.msk.msra.mxu0 %vm1061_vm1, %v906_v35 }
  0x30   :  { %914 = vmatprep.subr.msk.bf16.mxu0 %vm1061_vm1, %v912_v40 }
  0x37   :  { %917 = vmatpush3.bf16.xpose.msk.msra.mxu0 %vm1061_vm1, %v912_v40 }
  0x38   :  { %920 = vmatprep.subr.msk.bf16.mxu0 %vm1061_vm1, %v918_v43 }
  0x3f   :  { %923 = vmatpush3.bf16.xpose.msk.msra.mxu0 %vm1061_vm1, %v918_v43 }
  0x46   :  { %820 = vmatmul.mubr.msk.f32.vlgmr.msra.gmra.mrb[0].mxu0 %vm113_vm0, %v58_v44 }
  0x47   :  { %822 = vmatprep.mubr.msk.f32.mxu0 %vm113_vm0, %v59_v45 }
  0x4a   :  { %823 = vmatmul.mubr.msk.f32.gmra.mrb[2].mxu0 %vm113_vm0, %v60_v46  ;;  %v430_v46 = vld [vmem:[%s1263_s5 + $0x8] sm:$0xff] }
  0x4b   :  { %825 = vmatprep.mubr.msk.f32.mxu0 %vm113_vm0, %v61_v47  ;;  %v983_v47 = vmov 0.0|0.0  }
  0x4e   :  { %826 = vmatmul.mubr.msk.f32.gmra.mrb[4].mxu0 %vm113_vm0, %v62_v48  ;;  %v985_v48 = vmov 0.0  }
  0x4f   :  { %828 = vmatprep.mubr.msk.f32.mxu0 %vm113_vm0, %v63_v49 }
  0x52   :  { %829 = vmatmul.mubr.msk.f32.gmra.mrb[6].mxu0 %vm113_vm0, %v64_v50 }
  0x85   :  { %v86_v53 = vpop.permute.xlu1 %85 }
  0x86   :  { %v76_v52 = vpop.permute.xlu0 %75 }
  0x8a   :  { %v81_v54 = vpop.permute.xlu0 %80 }
  0x90   :  { %v91_v55 = vpop.permute.xlu1 %90 }
  0x92   :  { %v96_v4 = vpop.permute.xlu0 %95 }
  0x94   :  { %v101_v1 = vpop.permute.xlu1 %100 }
  0x96   :  { %v106_v16 = vpop.permute.xlu0 %105 }
  0x98   :  { %v111_v13 = vpop.permute.xlu1 %110 }
  0x9a   :  { %v310_v29 = vpop.permute.xlu0 %309 }
  0x9c   :  { %v315_v28 = vpop.permute.xlu1 %314 }
  0x9e   :  { %v320_v38 = vpop.permute.xlu0 %319 }
  0xa0   :  { %v325_v35 = vpop.permute.xlu1 %324 }
  0xa2   :  { %v436_v51 = vpop.permute.xlu0 %435 }
  0xa4   :  { %v441_v49 = vpop.permute.xlu1 %440 }
 0x119   :  { %v821_v56 = vpop.f32.mrb[0].mxu0 }
 0x11a   :  { %v258_v57 = vadd.f32 %v821_v56, %v81_v54  ;;  %v252_v58 = vpop.f32.mrb[1].mxu0 }
 0x11b   :  { %v253_v59 = vadd.f32 %v252_v58, %v76_v52  ;;  %v527_v58 = vld [vmem:[%s1265_s7] sm:$0xff]  ;;  %s986_s7 = smov [#allocation3]  }
 0x11c   :  { %v292_v60 = vmax.f32 %v258_v57, 0.0  ;;  %s700_s20 = sshll.u32 %s986_s7, 4  ;;  %s701_s20 = int_to_ptr.vmem [resolvable:$true] %s700_s20 }
 0x11d   :  { %v291_v61 = vmax.f32 %v253_v59, 0.0  ;;  %v824_v62 = vpop.f32.mrb[2].mxu0  ;;  %v532_v59 = vpop.permute.xlu0 %531  ;;  %s958_s21 = scalar_lea.vmem %s701_s20, 16  ;;  %s962_s0 = scalar_lea.vmem %s701_s20, 32 }
 0x11e   :  { %v268_v63 = vadd.f32 %v824_v62, %v91_v55  ;;  %v262_v0 = vpop.f32.mrb[3].mxu0  ;;  %p959_p0 = scmp.ne.s32.totalorder %s701_s20, %s958_s21  ;;  %p963_p1 = scmp.lt.s32.totalorder %s701_s20, %s701_s20 }
 0x11f   :  { %v263_v2 = vadd.f32 %v262_v0, %v86_v53  ;;  %v924_v3 = vpack.c.bf16 %v292_v60, %v291_v61  ;;  %v609_v0 = vld [vmem:[%s1267_s9] sm:$0x1]  ;;  %p964_p2 = scmp.lt.s32.totalorder %s962_s0, %s958_s21 }
 0x120   :  { %v294_v5 = vmax.f32 %v268_v63, 0.0 }
 0x121   :  { %v293_v6 = vmax.f32 %v263_v2, 0.0  ;;  %v827_v7 = vpop.f32.mrb[4].mxu0  ;;  %925 = vmatprep.subr.bf16.mxu1 %v924_v3  ;;  %p965_p3 = por %p964_p2, %p963_p1 }
 0x122   :  { %v278_v8 = vadd.f32 %v827_v7, %v101_v1  ;;  %v272_v9 = vpop.f32.mrb[5].mxu0  ;;  %927 = vmatpush3.bf16.msra.mxu1 %v924_v3  ;;  %v616_v1 = vlaneseq }
 0x123   :  { %v928_v10 = vpack.c.bf16 %v294_v5, %v293_v6  ;;  %v273_v11 = vadd.f32 %v272_v9, %v96_v4  ;;  %v614_v4 = vpop.permute.xlu1 %613  ;;  %p966_p4 = pnand %p965_p3, %p959_p0 }
 0x124   :  { %v296_v12 = vmax.f32 %v278_v8, 0.0  ;;  %v617_v2 = vshrl.u32 %v616_v1, 7 }
 0x125   :  { %v295_v14 = vmax.f32 %v273_v11, 0.0  ;;  %v830_v15 = vpop.f32.mrb[6].mxu0  ;;  %929 = vmatprep.subr.bf16.mxu1 %v928_v10 }
 0x126   :  { %v288_v17 = vadd.f32 %v830_v15, %v111_v13  ;;  %v282_v18 = vpop.f32.mrb[7].mxu0  ;;  %931 = vmatpush3.bf16.msra.mxu1 %v928_v10  ;;  %v618_v3 = vsub.s32 0, %v617_v2 }
 0x127   :  { %v932_v19 = vpack.c.bf16 %v296_v12, %v295_v14  ;;  %v283_v20 = vadd.f32 %v282_v18, %v106_v16 }
 0x128   :  { %v298_v21 = vmax.f32 %v288_v17, 0.0  ;;  %v619_v5 = vrot.slane %v614_v4, %v618_v3 }
 0x129   :  { %v297_v22 = vmax.f32 %v283_v20, 0.0  ;;  %933 = vmatprep.subr.bf16.mxu1 %v932_v19 }
 0x12a   :  { %935 = vmatpush3.bf16.msra.mxu1 %v932_v19 }
 0x12b   :  { %v936_v23 = vpack.c.bf16 %v298_v21, %v297_v22 }
 0x12d   :  { %937 = vmatprep.subr.bf16.mxu1 %v936_v23 }
 0x12e   :  { %939 = vmatpush3.bf16.msra.mxu1 %v936_v23 }
 0x131   :  { %848 = vmatmul.mubr.msk.f32.vlgmr.msra.gmra.mrb[0].mxu1 %vm327_vm2, %v300_v24 }
 0x132   :  { %850 = vmatprep.mubr.msk.f32.mxu1 %vm327_vm2, %v301_v25 }
 0x135   :  { %851 = vmatmul.mubr.msk.f32.gmra.mrb[2].mxu1 %vm327_vm2, %v302_v26 }
 0x136   :  { %861 = vmatprep.mubr.msk.f32.mxu1 %vm443_vm3, %v429_v27 }
 0x204   :  { %v849_v30 = vpop.f32.mrb[0].mxu1 }
 0x205   :  { %v412_v31 = vadd.f32 %v849_v30, %v315_v28  ;;  %v406_v32 = vpop.f32.mrb[1].mxu1 }
 0x206   :  { %v407_v33 = vadd.f32 %v406_v32, %v310_v29 }
 0x207   :  { %v426_v34 = vmax.f32 %v412_v31, 0.0 }
 0x208   :  { %v425_v36 = vmax.f32 %v407_v33, 0.0  ;;  %v852_v37 = vpop.f32.mrb[2].mxu1 }
 0x209   :  { %v422_v39 = vadd.f32 %v852_v37, %v325_v35  ;;  %v416_v40 = vpop.f32.mrb[3].mxu1 }
 0x20a   :  { %v940_v41 = vpack.c.bf16 %v426_v34, %v425_v36  ;;  %v417_v42 = vadd.f32 %v416_v40, %v320_v38 }
 0x20b   :  { %v428_v43 = vmax.f32 %v422_v39, 0.0 }
 0x20c   :  { %v427_v44 = vmax.f32 %v417_v42, 0.0  ;;  %941 = vmatprep.subr.bf16.mxu1 %v940_v41 }
 0x20d   :  { %943 = vmatpush3.bf16.msra.mxu1 %v940_v41 }
 0x20e   :  { %v944_v45 = vpack.c.bf16 %v428_v43, %v427_v44 }
 0x210   :  { %945 = vmatprep.subr.bf16.mxu1 %v944_v45 }
 0x211   :  { %947 = vmatpush3.bf16.msra.mxu1 %v944_v45 }
 0x212   :  { %948 = vmatprep.subr.bf16.mxu1 %v983_v47 }
 0x214   :  { %862 = vmatmul.mubr.msk.f32.vlgmr.msra.gmra.mrb[4].mxu1 %vm443_vm3, %v430_v46 }
 0x215   :  { %868 = vmatprep.mubr.msk.f32.mxu1 %vm984_vm4, %v985_v48 }
 0x2e7   :  { %v863_v50 = vpop.f32.mrb[4].mxu1 }
 0x2e8   :  { %v522_v52 = vadd.f32 %v863_v50, %v441_v49  ;;  %v516_v53 = vpop.f32.mrb[5].mxu1 }
 0x2e9   :  { %v517_v54 = vadd.f32 %v516_v53, %v436_v51 }
 0x2ea   :  { %v526_v55 = vmax.f32 %v522_v52, 0.0 }
 0x2eb   :  { %v525_v56 = vmax.f32 %v517_v54, 0.0 }
 0x2ed   :  { %v949_v57 = vpack.c.bf16 %v526_v55, %v525_v56 }
 0x2ef   :  { %950 = vmatpush3.bf16.msra.mxu1 %v949_v57 }
 0x2f0   :  { %871 = vmatprep.subr.mxu1 %v985_v48 }
 0x2f2   :  { %869 = vmatmul.mubr.msk.f32.vlgmr.msra.gmra.mrb[6].mxu1 %vm534_vm5, %v527_v58 }
 0x2f3   :  { %873 = vmatprep.mubr.msk.f32.mxu1 %vm984_vm4, %v985_v48 }
 0x3c5   :  { %v604_v60 = vpop.f32.mrb[6].mxu1 }
 0x3c6   :  { %v605_v61 = vadd.f32 %v604_v60, %v532_v59  ;;  %v870_v62 = vpop.f32.mrb[7].mxu1 }
 0x3c8   :  { %v608_v63 = vmax.f32 %v605_v61, 0.0 }
 0x3ca   :  { %872 = vmatpush3.msra.mxu1 %v608_v63 }
 0x3cb   :  { %874 = vmatmul.mubr.msk.f32.vlgmr.msra.gmra.mrb[8].mxu1 %vm113_vm0, %v609_v0 }
 0x49e   :  { %v689_v6 = vpop.f32.mrb[8].mxu1 }
 0x49f   :  { %v690_v7 = vadd.f32 %v689_v6, %v619_v5  ;;  %v875_v8 = vpop.f32.mrb[9].mxu1 }
 0x4a1   :  { %693 = vst [vmem:[#allocation3] sm:$0x1] %v690_v7 }
 0x4a2   :  { %969 = shalt.err (!%p966_p4)
}
 0x4a3   :  { %s970_s23 = scalar_lea.hbm %s1269_s11, 16 }
 0x4a4   :  { %p971_p5 = scmp.ne.s32.totalorder %s1269_s11, %s970_s23  ;;  %p974_p6 = scmp.lt.u32.totalorder %s970_s23, %s1269_s11 }
 0x4a6   :  { %p976_p7 = pnand %p974_p6, %p971_p5 }
 0x4a8   :  { %979 = shalt.err (!%p976_p7)
}
 0x4a9   :  { %703 = dma.vmem_to_hbm [thread:$0]  %s701_s20, 16, %s1269_s11, [#allocation4]  }
 0x4aa   :  { %980 = dma.done.wait [#allocation4], 16  }
 0x4ab   :  { %981 = vsyncadd [#allocation4], 4294967280 }
 0x4ac   :  { %707 = vsyncpa [#allocation4], 1 }

</bundles_post_ra>
